<compile_context>
chip_gen: v5e
topology: v5e:2x2
jax: 0.10.0
libtpu: 0.0.40
codegen_flags: <defaults>
</compile_context>

<pallas_src>
import jax
import jax.numpy as jnp
from jax.experimental import pallas as pl
from jax.experimental.pallas import tpu as pltpu

# ---- synthetic sizes (small, consistent with the forward's shape algebra) ----
B = 2              # batch
D_L = 32           # PLM vocab size  (PLM.config.vocab_size)
D_C = 16           # CoNN decoder vocab size (len(CoNNTokenizer.decoder_vocab))
HID = 32           # hidden size of the stand-in PLM / CoNN
SEQ_L = 8          # encoder input length
SEQ_C = 8          # CoNN input length
SPECIAL_TOKEN_ID = 7   # stand-in PLM-tokenizer id for the special word '->'

SUBLANES = 8
LANES = 128


def _round_up(x, m):
    return -(-x // m) * m


# --------------------------- fused Pallas kernel ------------------------------
def _fused_kernel(beta_ref, hl_ref, wl_ref, hc_ref, wc_ref, out_ref):
    """tanh -> head matmuls (MXU) -> softmax / beta-scale -> one lane-dense store."""
    hl = jnp.tanh(hl_ref[...])                                               # (Bp, HID)
    hc = jnp.tanh(hc_ref[...])                                               # (Bp, HID)

    # Stand-in PLM / CoNN heads, fused in so H_L / H_C never materialize in HBM.
    h_l = jnp.dot(hl, wl_ref[...], preferred_element_type=jnp.float32)       # (Bp, d_L)
    h_c = jnp.dot(hc, wc_ref[...], preferred_element_type=jnp.float32)       # (Bp, d_C)

    # torch.softmax(H_L, 1): numerically stable, exact division (rows sum to 1).
    m = jnp.max(h_l, axis=1, keepdims=True)
    e = jnp.exp(h_l - m)
    p = e / jnp.sum(e, axis=1, keepdims=True)

    beta = beta_ref[0]                                                       # f32 (SMEM)

    # Identity-matrix fusion == concat + scale; build the 128-lane-padded row
    # in-register and do ONE whole-block (unmasked) store.
    d_l = h_l.shape[1]
    d_c = h_c.shape[1]
    pad = out_ref.shape[1] - d_l - d_c
    pieces = [p, beta * h_c]
    if pad > 0:
        pieces.append(jnp.zeros((p.shape[0], pad), jnp.float32))
    out_ref[...] = jnp.concatenate(pieces, axis=1).astype(out_ref.dtype)


def nc_fused_heads(plm_hidden, plm_head, conn_hidden, conn_head, beta):
    """(B,HID),(HID,d_L),(B,HID),(HID,d_C),f32[1] -> (B, d_L + d_C) logits."""
    b, hid = plm_hidden.shape
    d_l = plm_head.shape[1]
    d_c = conn_head.shape[1]

    b_pad = _round_up(max(b, SUBLANES), SUBLANES)       # fill sublane dimension
    n_pad = _round_up(d_l + d_c, LANES)                 # lane-dense output width

    hl_p = jnp.zeros((b_pad, hid), jnp.float32).at[:b].set(plm_hidden.astype(jnp.float32))
    hc_p = jnp.zeros((b_pad, hid), jnp.float32).at[:b].set(conn_hidden.astype(jnp.float32))

    cost = pl.CostEstimate(
        flops=2 * b_pad * hid * (d_l + d_c) + 6 * b_pad * d_l,
        transcendentals=b_pad * (2 * hid + d_l),
        bytes_accessed=4 * (2 * b_pad * hid + hid * (d_l + d_c) + b_pad * n_pad + 1),
    )

    out = pl.pallas_call(
        _fused_kernel,
        out_shape=jax.ShapeDtypeStruct((b_pad, n_pad), jnp.float32),
        in_specs=[
            pl.BlockSpec(memory_space=pltpu.MemorySpace.SMEM),   # beta scalar
            pl.BlockSpec(memory_space=pltpu.MemorySpace.VMEM),   # PLM hidden (pre-tanh)
            pl.BlockSpec(memory_space=pltpu.MemorySpace.VMEM),   # PLM head weight
            pl.BlockSpec(memory_space=pltpu.MemorySpace.VMEM),   # CoNN hidden (pre-tanh)
            pl.BlockSpec(memory_space=pltpu.MemorySpace.VMEM),   # CoNN head weight
        ],
        out_specs=pl.BlockSpec(memory_space=pltpu.MemorySpace.VMEM),
        cost_estimate=cost,
    )(beta, hl_p, plm_head.astype(jnp.float32), hc_p, conn_head.astype(jnp.float32))

    return out[:b, :d_l + d_c]


# ---------------- deterministic stand-ins for PLM / CoNN (glue) ---------------
# TODO(synk): the real PLM (seq2seq LM), CoNN backbone and both tokenizers are
# external modules passed into __init__; they are modeled here as tiny
# deterministic embed+tanh+head networks producing logits of the right shape.
# The embedding gathers stay in XLA; tanh + head matmuls are fused in-kernel.
def init_params(key):
    k1, k2, k3, k4, k5 = jax.random.split(key, 5)
    s = 0.1
    return {
        "plm_enc_emb": s * jax.random.normal(k1, (D_L, HID), jnp.float32),
        "plm_dec_emb": s * jax.random.normal(k2, (D_L, HID), jnp.float32),
        "plm_head":    s * jax.random.normal(k3, (HID, D_L), jnp.float32),
        "conn_emb":    s * jax.random.normal(k4, (D_C, HID), jnp.float32),
        "conn_head":   s * jax.random.normal(k5, (HID, D_C), jnp.float32),
    }


def get_beta(output_token):
    """self._get_beta: 1.0 iff output_token[0][-1] is the special '->' token.

    Matches the original module (one beta per call, from batch element 0);
    computed as a traced on-device scalar so the forward stays jit-able.
    """
    return (output_token[0, -1] == SPECIAL_TOKEN_ID).astype(jnp.float32).reshape(1)


def nc_model_forward(params, x_l, x_c, output_token):
    enc = jnp.take(params["plm_enc_emb"], x_l, axis=0).mean(axis=1)       # (B, HID)
    dec = jnp.take(params["plm_dec_emb"], output_token[:, -1], axis=0)     # (B, HID)
    conn = jnp.take(params["conn_emb"], x_c[:, -1], axis=0)                # (B, HID)
    beta = get_beta(output_token)                                          # f32[1]
    return nc_fused_heads(enc + dec, params["plm_head"],
                          conn, params["conn_head"], beta)                 # (B, d_L+d_C)


def nc_model_forward_ref(params, x_l, x_c, output_token):
    """Pure-JAX reference of the exact torch math (identity fusion matmuls)."""
    enc = jnp.take(params["plm_enc_emb"], x_l, axis=0).mean(axis=1)
    dec = jnp.take(params["plm_dec_emb"], output_token[:, -1], axis=0)
    h_l = jnp.tanh(enc + dec) @ params["plm_head"]                         # (B, d_L)
    emb = jnp.take(params["conn_emb"], x_c[:, -1], axis=0)
    h_c = jnp.tanh(emb) @ params["conn_head"]                              # (B, d_C)
    beta = get_beta(output_token)[0]
    fusion_l = jnp.zeros((D_L, D_L + D_C), jnp.float32).at[:, :D_L].set(jnp.eye(D_L))
    fusion_c = jnp.zeros((D_C, D_L + D_C), jnp.float32).at[:, D_L:].set(beta * jnp.eye(D_C))
    return jax.nn.softmax(h_l, axis=1) @ fusion_l + h_c @ fusion_c


if __name__ == "__main__":
    key = jax.random.PRNGKey(0)
    kp, kx, kc = jax.random.split(key, 3)
    params = init_params(kp)

    x_l = jax.random.randint(kx, (B, SEQ_L), 0, D_L, dtype=jnp.int32)
    x_c = jax.random.randint(kc, (B, SEQ_C), 0, D_C, dtype=jnp.int32)

    fwd = jax.jit(nc_model_forward)

    # Case 1: last decoder token is the special '->' token  ->  beta = 1.
    out_tok_special = jnp.array([[0, SPECIAL_TOKEN_ID]] * B, dtype=jnp.int32)
    logits1 = jax.block_until_ready(fwd(params, x_l, x_c, out_tok_special))
    ref1 = nc_model_forward_ref(params, x_l, x_c, out_tok_special)
    assert logits1.shape == (B, D_L + D_C)
    assert jnp.allclose(logits1, ref1, atol=1e-3, rtol=1e-3)
    # Exact-division softmax: rows sum to 1.
    assert jnp.allclose(jnp.sum(logits1[:, :D_L], axis=1), 1.0, atol=1e-5)

    # Case 2: last decoder token is ordinary  ->  beta = 0 (CoNN branch gated off).
    out_tok_plain = jnp.array([[0, 3]] * B, dtype=jnp.int32)
    logits0 = jax.block_until_ready(fwd(params, x_l, x_c, out_tok_plain))
    ref0 = nc_model_forward_ref(params, x_l, x_c, out_tok_plain)
    assert jnp.allclose(logits0, ref0, atol=1e-3, rtol=1e-3)
    assert jnp.allclose(logits0[:, D_L:], 0.0, atol=1e-6)   # beta=0 zeroes the CoNN slice

    print("KERNEL_OK")
</pallas_src>

<mosaic_0001>
module attributes {stable_mosaic.version = 11 : i64} {
  func.func @_fused_kernel(%arg0: memref<1xf32, #tpu.memory_space<smem>>, %arg1: memref<8x32xf32, #tpu.memory_space<vmem>>, %arg2: memref<32x32xf32, #tpu.memory_space<vmem>>, %arg3: memref<8x32xf32, #tpu.memory_space<vmem>>, %arg4: memref<32x16xf32, #tpu.memory_space<vmem>>, %arg5: memref<8x128xf32, #tpu.memory_space<vmem>>) attributes {dimension_semantics = [], scalar_prefetch = 0 : i64, scratch_operands = 0 : i64, tpu.core_type = #tpu.core_type<tc>} {
    %c0 = arith.constant 0 : index
    %c0_0 = arith.constant 0 : index
    %0 = vector.load %arg1[%c0, %c0_0] : memref<8x32xf32, #tpu.memory_space<vmem>>, vector<8x32xf32>
    %1 = math.tanh %0 : vector<8x32xf32>
    %c0_1 = arith.constant 0 : index
    %c0_2 = arith.constant 0 : index
    %2 = vector.load %arg3[%c0_1, %c0_2] : memref<8x32xf32, #tpu.memory_space<vmem>>, vector<8x32xf32>
    %3 = math.tanh %2 : vector<8x32xf32>
    %c0_3 = arith.constant 0 : index
    %c0_4 = arith.constant 0 : index
    %4 = vector.load %arg2[%c0_3, %c0_4] : memref<32x32xf32, #tpu.memory_space<vmem>>, vector<32x32xf32>
    %cst = arith.constant dense<0.000000e+00> : vector<8x32xf32>
    %5 = tpu.matmul %1, %4, %cst {dimension_numbers = #tpu.dot_dimension_numbers<[1], [0], [0], [1], [0, 0, 1, 1], [], []>} : vector<8x32xf32>, vector<32x32xf32>, vector<8x32xf32> -> vector<8x32xf32>
    %c0_5 = arith.constant 0 : index
    %c0_6 = arith.constant 0 : index
    %6 = vector.load %arg4[%c0_5, %c0_6] : memref<32x16xf32, #tpu.memory_space<vmem>>, vector<32x16xf32>
    %cst_7 = arith.constant dense<0.000000e+00> : vector<8x16xf32>
    %7 = tpu.matmul %3, %6, %cst_7 {dimension_numbers = #tpu.dot_dimension_numbers<[1], [0], [0], [1], [0, 0, 1, 1], [], []>} : vector<8x32xf32>, vector<32x16xf32>, vector<8x16xf32> -> vector<8x16xf32>
    %cst_8 = arith.constant dense<0xFF800000> : vector<8xf32>
    %8 = vector.multi_reduction <maximumf>, %5, %cst_8 [1] : vector<8x32xf32> to vector<8xf32>
    %9 = vector.shape_cast %8 : vector<8xf32> to vector<8x1xf32>
    %10 = vector.broadcast %9 : vector<8x1xf32> to vector<8x32xf32>
    %11 = arith.subf %5, %10 : vector<8x32xf32>
    %12 = math.exp %11 : vector<8x32xf32>
    %cst_9 = arith.constant dense<0.000000e+00> : vector<8xf32>
    %13 = vector.multi_reduction <add>, %12, %cst_9 [1] : vector<8x32xf32> to vector<8xf32>
    %14 = vector.shape_cast %13 : vector<8xf32> to vector<8x1xf32>
    %15 = vector.broadcast %14 : vector<8x1xf32> to vector<8x32xf32>
    %16 = arith.divf %12, %15 : vector<8x32xf32>
    %c0_10 = arith.constant 0 : index
    %17 = memref.load %arg0[%c0_10] : memref<1xf32, #tpu.memory_space<smem>>
    %18 = vector.broadcast %17 : f32 to vector<8x16xf32>
    %19 = arith.mulf %18, %7 : vector<8x16xf32>
    %cst_11 = arith.constant 0.000000e+00 : f32
    %20 = vector.broadcast %cst_11 : f32 to vector<8x80xf32>
    %21 = tpu.concatenate %16, %19, %20 in 1 : vector<8x32xf32>, vector<8x16xf32>, vector<8x80xf32> -> vector<8x128xf32>
    %c0_12 = arith.constant 0 : index
    %c0_13 = arith.constant 0 : index
    %22 = vector.load %arg5[%c0_12, %c0_13] : memref<8x128xf32, #tpu.memory_space<vmem>>, vector<8x128xf32>
    tpu.vector_store %arg5[%c0_12, %c0_13], %21 {strides = array<i32>} : memref<8x128xf32, #tpu.memory_space<vmem>>, vector<8x128xf32>,
    return
  }
}

</mosaic_0001>

<bundles_post_ra>
// kernel: nc_model_forward.1
= control target key start
LH: loop header
LB: loop body
LE: loop exit
PB: predicated region body
PF: predicated region fallthrough
CT: control target
= control target key end

     0   :  { %vm29_vm0 = vcmask 261120   ;;  %s130_s12 = smov 32   ;;  %vm112_vm5 = vcmask 392192   ;;  %s202_s2 = inlined_call_operand.vmem [shape: f32[32,32], index: 2, kind: input, shape index: {}]   ;;  %s203_s1 = inlined_call_operand.vmem [shape: f32[8,32], index: 1, kind: input, shape index: {}]   ;;  %s204_s4 = inlined_call_operand.vmem [shape: f32[32,16], index: 4, kind: input, shape index: {}]   ;;  %s205_s3 = inlined_call_operand.vmem [shape: f32[8,32], index: 3, kind: input, shape index: {}]   ;;  %s206_s0 = inlined_call_operand.<no memory space> [shape: f32[1], index: 0, kind: input, shape index: {}]   ;;  %s207_s5 = inlined_call_operand.vmem [shape: f32[8,128], index: 5, kind: output, shape index: {}]  }
   0x1   :  { %v28_v0 = vld [vmem:[%s202_s2 + $0x18] sm:$0xff]  ;;  %v27_v1 = vld [vmem:[%s202_s2 + $0x10] sm:$0xff]  ;;  %v21_v2 = vld [vmem:[%s203_s1] sm:$0xff]  ;;  %v105_v14 = vstv %s206_s0 }
   0x2   :  { %45 = vmatpush.msra.mxu0 %v28_v0  ;;  %v26_v3 = vld [vmem:[%s202_s2 + $0x8] sm:$0xff]  ;;  %122 = vtanh.f32 %v21_v2  ;;  %v25_v4 = vld [vmem:[%s202_s2] sm:$0xff]  ;;  %v56_v6 = vld [vmem:[%s204_s4 + $0x18] sm:$0xff] }
   0x3   :  { %v55_v7 = vld [vmem:[%s204_s4 + $0x10] sm:$0xff]  ;;  %72 = vmatpush.msra.mxu1 %v56_v6  ;;  %v23_v8 = vld [vmem:[%s205_s3] sm:$0xff]  ;;  %v54_v9 = vld [vmem:[%s204_s4 + $0x8] sm:$0xff] }
   0x4   :  { %46 = vmatpush.msra.mxu0 %v27_v1  ;;  %124 = vtanh.f32 %v23_v8  ;;  %v53_v10 = vld [vmem:[%s204_s4] sm:$0xff] }
   0x5   :  { %73 = vmatpush.msra.mxu1 %v55_v7 }
   0x6   :  { %47 = vmatpush.msra.mxu0 %v26_v3 }
   0x7   :  { %74 = vmatpush.msra.mxu1 %v54_v9 }
   0x8   :  { %48 = vmatpush.msra.mxu0 %v25_v4  ;;  %v123_v5 = vpop.eup %122 }
   0x9   :  { %119 = vmatmul.msk.f32.vlgmr.msra.gmra.mxu0 %vm29_vm0, %v123_v5  ;;  %75 = vmatpush.msra.mxu1 %v53_v10 }
   0xa   :  { %v125_v11 = vpop.eup %124 }
   0xb   :  { %120 = vmatmul.msk.f32.vlgmr.msra.gmra.mxu1 %vm29_vm0, %v125_v11 }
  0x86   :  { %v50_v12 = vpop.f32.mrf.mxu0 }
  0x87   :  { %v80_v13 = vsel %vm29_vm0, %v50_v12, -inf }
  0x88   :  { %81 = vmax.xlane.f32.xlu0 %v80_v13  ;;  %v77_v15 = vpop.f32.mrf.mxu1 }
  0x89   :  { %v106_v16 = vmul.f32 %v105_v14, %v77_v15 }
  0x8b   :  { %108 = vrot.lane.b32.xlu1 %v106_v16, %s130_s12 }
  0xfb   :  { %v82_v17 = vpop.xlane.xlu0 %81 }
  0xfc   :  { %v83_v18 = vsub.f32 %v50_v12, %v82_v17 }
  0xfd   :  { %v109_v33 = vpop.permute.xlu1 %108 }
  0xfe   :  { %v84_v19 = vmul.f32 1.442695, %v83_v18 }
 0x100   :  { %126 = vpow2.f32 %v84_v19 }
 0x106   :  { %v127_v20 = vpop.eup %126 }
 0x107   :  { %v86_v21 = vsel %vm29_vm0, %v127_v20, 0.0 }
 0x108   :  { %87 = vadd.xlane.f32.xlu0 %v86_v21 }
 0x17b   :  { %v88_v22 = vpop.xlane.xlu0 %87 }
 0x17c   :  { %128 = vrcp.f32 %v88_v22  ;;  %v100_v26 = vand.u32 2147483648, %v88_v22  ;;  %v98_v28 = vand.u32 2147483647, %v88_v22  ;;  %vm94_vm2 = vweird.f32 %v88_v22 }
 0x17e   :  { %v101_v30 = vor.u32 1.1754944e-38, %v100_v26  ;;  %vm99_vm4 = vcmp.eq.f32.partialorder %v98_v28, 8.507059e+37 }
 0x182   :  { %v129_v23 = vpop.eup %128 }
 0x183   :  { %v90_v24 = vmul.f32 %v129_v23, %v88_v22  ;;  %vm95_vm1 = vweird.f32 %v129_v23 }
 0x184   :  { %vm96_vm3 = vmor %vm94_vm2, %vm95_vm1 }
 0x185   :  { %v91_v25 = vsub.f32 1.0, %v90_v24 }
 0x187   :  { %v92_v27 = vmul.f32 %v129_v23, %v91_v25 }
 0x189   :  { %v93_v29 = vadd.f32 %v129_v23, %v92_v27 }
 0x18b   :  { %v97_v31 = vsel %vm96_vm3, %v129_v23, %v93_v29 }
 0x18c   :  { %v102_v32 = vsel %vm99_vm4, %v101_v30, %v97_v31 }
 0x18d   :  { %v103_v34 = vmul.f32 %v127_v20, %v102_v32 }
 0x18f   :  { %v111_v35 = vsel %vm29_vm0, %v103_v34, %v109_v33 }
 0x190   :  { %v113_v36 = vsel %vm112_vm5, %v111_v35, 0.0 }
 0x191   :  { %114 = vst [vmem:[%s207_s5] sm:$0xff] %v113_v36 }

</bundles_post_ra>
